<compile_context>
chip_gen: v6e
topology: v6e:2x2x1
jax: 0.10.0
libtpu: 0.0.40
codegen_flags: <defaults>
</compile_context>

<pallas_src>
import math
import functools

import jax
import jax.numpy as jnp
from jax import lax
from jax.experimental import pallas as pl
from jax.experimental.pallas import tpu as pltpu


def _pos_embed_kernel(carry_ref, total_ref, mask_ref, tri_ref, const_ref, out_ref, *,
                      num_pos_feats, pack, normalize, scale):
    # carry_ref : SMEM (B, n_tiles) int32 -- # valid positions before this tile
    # total_ref : SMEM (B,)         int32 -- # valid positions in the whole sequence
    # mask_ref  : VMEM (1, TR, P)   int32 -- padding-mask tile (1 = masked)
    # tri_ref   : VMEM (TR, TR)     bf16  -- strictly-lower-triangular ones (constant)
    # const_ref : VMEM (2, PF)      f32   -- row 0: 1/dim_t, row 1: phase (0 / pi/2)
    # out_ref   : VMEM (1, TR, PF)  f32   -- packed, lane-dense output tile
    F = num_pos_feats
    P = pack
    TR = mask_ref.shape[1]
    PF = P * F
    b = pl.program_id(0)
    t = pl.program_id(1)

    # not-mask tile; row r, lane j corresponds to position P*(t*TR + r) + j.
    nm32 = (1 - mask_ref[0]).astype(jnp.float32)                      # (TR, P)
    nm = nm32.astype(jnp.bfloat16)                                     # exact 0/1

    # Cross-row exclusive prefix inside the tile: one MXU pass (0/1 bf16 operands,
    # f32 accumulation -> exact), then a tiny lane reduction over P.
    row_carry = jnp.dot(tri_ref[...], nm, preferred_element_type=jnp.float32)  # (TR, P)
    carry_col = jnp.sum(row_carry, axis=1, keepdims=True)                       # (TR, 1)

    # Add the cross-tile carry (precomputed in the wrapper, read from SMEM).
    tile_carry = jnp.full((1, 1), carry_ref[b, t], dtype=jnp.int32).astype(jnp.float32)
    carry_col = carry_col + tile_carry

    # Within-row inclusive prefix, expanded straight into the packed feature
    # layout by a second small matmul: uexp[j', j*F + f] = 1 iff j' <= j
    # (c >= j'*F  <=>  c // F >= j'; avoids in-kernel integer division).
    if P == 1:
        within = jnp.broadcast_to(nm32, (TR, PF))
    else:
        c_idx = lax.broadcasted_iota(jnp.int32, (P, PF), 1)
        j_idx = lax.broadcasted_iota(jnp.int32, (P, PF), 0)
        uexp = (c_idx >= j_idx * F).astype(jnp.bfloat16)
        within = jnp.dot(nm, uexp, preferred_element_type=jnp.float32)          # (TR, PF)

    embed = within + carry_col                                                   # (TR, PF)

    inv_row = const_ref[0:1, :]                                                  # (1, PF)
    phase_row = const_ref[1:2, :]                                                # (1, PF)
    if normalize:
        # embed * scale / (total + eps): fold the per-batch factor into the
        # per-lane reciprocal row (vector ops only; exact-int total from SMEM).
        total_vec = jnp.full((1, 1), total_ref[b], dtype=jnp.int32).astype(jnp.float32)
        inv_row = inv_row * (jnp.float32(scale) / (total_vec + 1e-6))

    # Single transcendental per output element: cos(x) = sin(x + pi/2).
    out_ref[0] = jnp.sin(embed * inv_row + phase_row)


def position_embedding_sine(x, mask=None, *, num_pos_feats=64, temperature=10000,
                            normalize=False, scale=None, tile_rows=None):
    """JAX/Pallas equivalent of PositionEmbeddingSine.forward.

    `tile_rows` optionally overrides the packed-row tile size (testing/tuning).
    """
    if scale is not None and normalize is False:
        raise ValueError("normalize should be True if scale is passed")
    if scale is None:
        scale = 2 * math.pi

    B, L = x.shape[:2]
    F = int(num_pos_feats)

    if mask is None:
        mask_i32 = jnp.zeros((B, L), dtype=jnp.int32)
    else:
        mask_i32 = mask.astype(jnp.int32)

    # ---- pack P consecutive positions per output row so PF = P*F is a multiple
    # of 128 (unmasked lane-dense vst), targeting PF ~ 512.
    P = 128 // math.gcd(F, 128)
    while P * F < 512:
        P *= 2
    PF = P * F

    # ---- packed-row tiling over the position axis (grid axis 1).
    R = -(-L // P)
    if tile_rows is not None:
        TR = max(8, ((int(tile_rows) + 7) // 8) * 8)
    elif R > 256:
        TR = 256
    else:
        TR = max(8, ((R + 7) // 8) * 8)
    n_tiles = -(-R // TR)
    R_pad = n_tiles * TR
    L_pad = R_pad * P

    # ---- pad the mask with 1s (padded positions contribute 0 to the cumsum and
    # are sliced off the output), reshape to the packed (B, R_pad, P) layout.
    mask_pad = jnp.pad(mask_i32, ((0, 0), (0, L_pad - L)), constant_values=1)
    mask_rp = mask_pad.reshape(B, R_pad, P)

    # ---- tiny host-side scan: per-tile exclusive carries + per-batch totals,
    # passed to the kernel as int32 SMEM scalars (scalar prefetch).
    nm_int = 1 - mask_pad                                              # (B, L_pad)
    tile_sums = nm_int.reshape(B, n_tiles, TR * P).sum(axis=2)
    carries = (jnp.cumsum(tile_sums, axis=1) - tile_sums).astype(jnp.int32)
    totals = nm_int.sum(axis=1).astype(jnp.int32)                      # == embed[:, -1]

    # ---- hoisted constants (computed once, outside the grid).
    f_idx = jnp.arange(PF, dtype=jnp.int32) % F
    inv_dim_t = jnp.power(
        jnp.float32(temperature),
        -(2.0 * (f_idx // 2).astype(jnp.float32)) / jnp.float32(F))
    phase = (f_idx % 2).astype(jnp.float32) * jnp.float32(math.pi / 2.0)
    consts = jnp.stack([inv_dim_t, phase], axis=0)                     # (2, PF) f32

    r_idx = jnp.arange(TR, dtype=jnp.int32)
    tri = (r_idx[:, None] > r_idx[None, :]).astype(jnp.bfloat16)       # (TR, TR)

    kernel = functools.partial(_pos_embed_kernel, num_pos_feats=F, pack=P,
                               normalize=normalize, scale=float(scale))

    cost = pl.CostEstimate(
        flops=2 * B * n_tiles * (TR * TR * P + TR * P * PF) + 5 * B * R_pad * PF,
        transcendentals=B * R_pad * PF,
        bytes_accessed=4 * B * R_pad * PF + 4 * B * L_pad + 2 * TR * TR
                       + 8 * PF + 4 * (B * n_tiles + B))

    out_packed = pl.pallas_call(
        kernel,
        out_shape=jax.ShapeDtypeStruct((B, R_pad, PF), jnp.float32),
        grid_spec=pltpu.PrefetchScalarGridSpec(
            num_scalar_prefetch=2,
            grid=(B, n_tiles),
            in_specs=[
                pl.BlockSpec((1, TR, P), lambda b, t, carry, tot: (b, t, 0)),   # mask tile
                pl.BlockSpec((TR, TR), lambda b, t, carry, tot: (0, 0)),        # tri (const)
                pl.BlockSpec((2, PF), lambda b, t, carry, tot: (0, 0)),         # 1/dim_t, phase
            ],
            out_specs=pl.BlockSpec((1, TR, PF), lambda b, t, carry, tot: (b, t, 0)),
        ),
        compiler_params=pltpu.CompilerParams(
            dimension_semantics=("parallel", "parallel"),
            vmem_limit_bytes=32 * 1024 * 1024),
        cost_estimate=cost,
    )(carries, totals, mask_rp, tri, consts)

    # (B, R_pad, P*F) -> (B, L_pad, F) is a free contiguous reshape; drop padding.
    return out_packed.reshape(B, L_pad, F)[:, :L, :]


def _reference(x, mask=None, *, num_pos_feats=64, temperature=10000,
               normalize=False, scale=None):
    """Pure-JAX reference mirroring the PyTorch forward exactly."""
    if scale is None:
        scale = 2 * math.pi
    B, L = x.shape[:2]
    if mask is None:
        mask = jnp.zeros((B, L), dtype=bool)
    not_mask = (~mask).astype(jnp.float32)
    embed = jnp.cumsum(not_mask, axis=1)
    if normalize:
        embed = embed / (embed[:, -1:] + 1e-6) * scale
    dim_t = jnp.arange(num_pos_feats, dtype=jnp.float32)
    dim_t = temperature ** (2 * (dim_t // 2) / num_pos_feats)
    pos = embed[:, :, None] / dim_t
    pos = jnp.stack((jnp.sin(pos[:, :, 0::2]), jnp.cos(pos[:, :, 1::2])),
                    axis=3).reshape(B, L, num_pos_feats)
    return pos


if __name__ == "__main__":
    key = jax.random.PRNGKey(0)
    B, L, D = 2, 8, 32          # x: (batch, seq, hidden); only (B, L) matters
    F = 64

    x = jax.random.normal(key, (B, L, D), dtype=jnp.float32)

    # Case 1: no mask, no normalization.
    pos = jax.block_until_ready(
        position_embedding_sine(x, mask=None, num_pos_feats=F))
    ref = _reference(x, mask=None, num_pos_feats=F)
    assert pos.shape == (B, L, F)
    assert jnp.allclose(pos, ref, atol=1e-5, rtol=1e-5)

    # Case 2: padding mask + normalize (exercises cumsum + normalize paths).
    lengths = jnp.array([8, 5])
    mask = jnp.arange(L)[None, :] >= lengths[:, None]                   # (B, L) bool
    pos2 = jax.block_until_ready(
        position_embedding_sine(x, mask=mask, num_pos_feats=F,
                                normalize=True, scale=2 * math.pi))
    ref2 = _reference(x, mask=mask, num_pos_feats=F,
                      normalize=True, scale=2 * math.pi)
    assert jnp.allclose(pos2, ref2, atol=1e-5, rtol=1e-5)

    # Case 3: force a multi-tile grid (tile_rows=8) to exercise the cross-tile
    # SMEM carries and the L padding path at small shapes.
    L3 = 160
    x3 = jax.random.normal(key, (B, L3, D), dtype=jnp.float32)
    lengths3 = jnp.array([160, 97])
    mask3 = jnp.arange(L3)[None, :] >= lengths3[:, None]
    pos3 = jax.block_until_ready(
        position_embedding_sine(x3, mask=mask3, num_pos_feats=F,
                                normalize=True, tile_rows=8))
    ref3 = _reference(x3, mask=mask3, num_pos_feats=F, normalize=True)
    assert pos3.shape == (B, L3, F)
    assert jnp.allclose(pos3, ref3, atol=1e-5, rtol=1e-5)

    print("KERNEL_OK")
</pallas_src>

<mosaic_0001>
module attributes {stable_mosaic.version = 11 : i64} {
  func.func @_pos_embed_kernel(%arg0: i32, %arg1: i32, %arg2: memref<2x1xi32, #tpu.memory_space<smem>>, %arg3: memref<2xi32, #tpu.memory_space<smem>>, %arg4: memref<1x8x8xi32, #tpu.memory_space<vmem>>, %arg5: memref<8x8xbf16, #tpu.memory_space<vmem>>, %arg6: memref<2x512xf32, #tpu.memory_space<vmem>>, %arg7: memref<1x8x512xf32, #tpu.memory_space<vmem>>) attributes {dimension_semantics = [#tpu.dimension_semantics<parallel>, #tpu.dimension_semantics<parallel>], iteration_bounds = array<i64: 2, 1>, scalar_prefetch = 2 : i64, scratch_operands = 0 : i64, tpu.core_type = #tpu.core_type<tc>, window_params = [{transform_indices = @transform_0, window_bounds = array<i64: 1, 8, 8>}, {pipeline_mode = #tpu.pipeline_mode<synchronous>, transform_indices = @transform_1, window_bounds = array<i64: 8, 8>}, {pipeline_mode = #tpu.pipeline_mode<synchronous>, transform_indices = @transform_2, window_bounds = array<i64: 2, 512>}, {transform_indices = @transform_3, window_bounds = array<i64: 1, 8, 512>}]} {
    %c0 = arith.constant 0 : index
    %c0_0 = arith.constant 0 : index
    %c0_1 = arith.constant 0 : index
    %0 = vector.load %arg4[%c0, %c0_0, %c0_1] : memref<1x8x8xi32, #tpu.memory_space<vmem>>, vector<1x8x8xi32>
    %1 = vector.shape_cast %0 : vector<1x8x8xi32> to vector<8x8xi32>
    %c1_i32 = arith.constant 1 : i32
    %2 = vector.broadcast %c1_i32 : i32 to vector<8x8xi32>
    %3 = arith.subi %2, %1 : vector<8x8xi32>
    %4 = arith.sitofp %3 : vector<8x8xi32> to vector<8x8xf32>
    %5 = arith.truncf %4 : vector<8x8xf32> to vector<8x8xbf16>
    %c0_2 = arith.constant 0 : index
    %c0_3 = arith.constant 0 : index
    %6 = vector.load %arg5[%c0_2, %c0_3] : memref<8x8xbf16, #tpu.memory_space<vmem>>, vector<8x8xbf16>
    %cst = arith.constant dense<0.000000e+00> : vector<8x8xf32>
    %7 = tpu.matmul %6, %5, %cst {dimension_numbers = #tpu.dot_dimension_numbers<[1], [0], [0], [1], [0, 0, 1, 1], [], []>} : vector<8x8xbf16>, vector<8x8xbf16>, vector<8x8xf32> -> vector<8x8xf32>
    %cst_4 = arith.constant dense<0.000000e+00> : vector<8xf32>
    %8 = vector.multi_reduction <add>, %7, %cst_4 [1] : vector<8x8xf32> to vector<8xf32>
    %9 = vector.shape_cast %8 : vector<8xf32> to vector<8x1xf32>
    %10 = arith.index_cast %arg0 : i32 to index
    %11 = arith.index_cast %arg1 : i32 to index
    %12 = memref.load %arg2[%10, %11] : memref<2x1xi32, #tpu.memory_space<smem>>
    %13 = vector.broadcast %12 : i32 to vector<1x1xi32>
    %14 = arith.sitofp %13 : vector<1x1xi32> to vector<1x1xf32>
    %15 = vector.broadcast %14 : vector<1x1xf32> to vector<8x1xf32>
    %16 = arith.addf %9, %15 : vector<8x1xf32>
    %17 = tpu.iota {dimensions = array<i32: 1>} : vector<8x512xi32>
    %18 = tpu.iota {dimensions = array<i32: 0>} : vector<8x512xi32>
    %c64_i32 = arith.constant 64 : i32
    %19 = vector.broadcast %c64_i32 : i32 to vector<8x512xi32>
    %20 = arith.muli %18, %19 : vector<8x512xi32>
    %21 = arith.cmpi sge, %17, %20 : vector<8x512xi32>
    %22 = arith.extui %21 : vector<8x512xi1> to vector<8x512xi32>
    %23 = arith.sitofp %22 : vector<8x512xi32> to vector<8x512xf32>
    %24 = arith.truncf %23 : vector<8x512xf32> to vector<8x512xbf16>
    %cst_5 = arith.constant dense<0.000000e+00> : vector<8x512xf32>
    %25 = tpu.matmul %5, %24, %cst_5 {dimension_numbers = #tpu.dot_dimension_numbers<[1], [0], [0], [1], [0, 0, 1, 1], [], []>} : vector<8x8xbf16>, vector<8x512xbf16>, vector<8x512xf32> -> vector<8x512xf32>
    %26 = vector.broadcast %16 : vector<8x1xf32> to vector<8x512xf32>
    %27 = arith.addf %25, %26 : vector<8x512xf32>
    %c0_6 = arith.constant 0 : index
    %c0_7 = arith.constant 0 : index
    %28 = vector.load %arg6[%c0_6, %c0_7] : memref<2x512xf32, #tpu.memory_space<vmem>>, vector<1x512xf32>
    %c1 = arith.constant 1 : index
    %c0_8 = arith.constant 0 : index
    %29 = vector.load %arg6[%c1, %c0_8] : memref<2x512xf32, #tpu.memory_space<vmem>>, vector<1x512xf32>
    %30 = vector.broadcast %28 : vector<1x512xf32> to vector<8x512xf32>
    %31 = arith.mulf %27, %30 : vector<8x512xf32>
    %32 = vector.broadcast %29 : vector<1x512xf32> to vector<8x512xf32>
    %33 = arith.addf %31, %32 : vector<8x512xf32>
    %34 = math.sin %33 : vector<8x512xf32>
    %c0_9 = arith.constant 0 : index
    %c0_10 = arith.constant 0 : index
    %c0_11 = arith.constant 0 : index
    %35 = vector.load %arg7[%c0_9, %c0_10, %c0_11] : memref<1x8x512xf32, #tpu.memory_space<vmem>>, vector<1x8x512xf32>
    %36 = vector.shape_cast %35 : vector<1x8x512xf32> to vector<8x512xf32>
    %37 = vector.shape_cast %34 : vector<8x512xf32> to vector<1x8x512xf32>
    tpu.vector_store %arg7[%c0_9, %c0_10, %c0_11], %37 {strides = array<i32>} : memref<1x8x512xf32, #tpu.memory_space<vmem>>, vector<1x8x512xf32>,
    return
  }
  func.func @transform_0(%arg0: i32, %arg1: i32, %arg2: memref<2x1xi32, #tpu.memory_space<smem>>, %arg3: memref<2xi32, #tpu.memory_space<smem>>) -> (i32, i32, i32) {
    %c0_i32 = arith.constant 0 : i32
    %c0_i32_0 = arith.constant 0 : i32
    return %arg0, %arg1, %c0_i32 : i32, i32, i32
  }
  func.func @transform_1(%arg0: i32, %arg1: i32, %arg2: memref<2x1xi32, #tpu.memory_space<smem>>, %arg3: memref<2xi32, #tpu.memory_space<smem>>) -> (i32, i32) {
    %c0_i32 = arith.constant 0 : i32
    %c0_i32_0 = arith.constant 0 : i32
    %c0_i32_1 = arith.constant 0 : i32
    return %c0_i32, %c0_i32_0 : i32, i32
  }
  func.func @transform_2(%arg0: i32, %arg1: i32, %arg2: memref<2x1xi32, #tpu.memory_space<smem>>, %arg3: memref<2xi32, #tpu.memory_space<smem>>) -> (i32, i32) {
    %c0_i32 = arith.constant 0 : i32
    %c0_i32_0 = arith.constant 0 : i32
    %c0_i32_1 = arith.constant 0 : i32
    return %c0_i32, %c0_i32_0 : i32, i32
  }
  func.func @transform_3(%arg0: i32, %arg1: i32, %arg2: memref<2x1xi32, #tpu.memory_space<smem>>, %arg3: memref<2xi32, #tpu.memory_space<smem>>) -> (i32, i32, i32) {
    %c0_i32 = arith.constant 0 : i32
    %c0_i32_0 = arith.constant 0 : i32
    return %arg0, %arg1, %c0_i32 : i32, i32, i32
  }
}

</mosaic_0001>

<bundles_post_ra>
// kernel: tpu_custom_call.1
= control target key start
LH: loop header
LB: loop body
LE: loop exit
PB: predicated region body
PF: predicated region fallthrough
CT: control target
= control target key end

     0   :  { %s1872_s0 = inlined_call_operand.vmem [shape: s32[2,1], index: 0, kind: input, shape index: {}]   ;;  %s1873_s2 = inlined_call_operand.hbm [shape: s32[2,8,8], index: 2, kind: input, shape index: {}]   ;;  %s1874_s3 = inlined_call_operand.hbm [shape: bf16[8,8], index: 3, kind: input, shape index: {}]   ;;  %s1875_s4 = inlined_call_operand.vmem [shape: f32[2,512], index: 4, kind: input, shape index: {}]   ;;  %s1876_s5 = inlined_call_operand.hbm [shape: f32[2,8,512], index: 5, kind: output, shape index: {}]   ;;  %s1877_s1 = inlined_call_operand.vmem [shape: s32[2], index: 1, kind: input, shape index: {}]  }
   0x1   :  { %s10_s20 = sshll.u32 %s1872_s0, 4  ;;  %s14_s23 = sshll.u32 %s1877_s1, 4  ;;  %s11_s20 = int_to_ptr.vmem [resolvable:$true] %s10_s20  ;;  %s15_s23 = int_to_ptr.vmem [resolvable:$true] %s14_s23 }
   0x2   :  { %s1166_s24 = scalar_lea.vmem %s11_s20, 32  ;;  %p1171_p1 = scmp.lt.s32.totalorder %s11_s20, %s11_s20 }
   0x3   :  { %p1167_p0 = scmp.ne.s32.totalorder %s11_s20, %s1166_s24  ;;  %p1172_p2 = scmp.lt.s32.totalorder %s1166_s24, %s1166_s24 }
   0x5   :  { %p1173_p3 = por %p1172_p2, %p1171_p1 }
   0x7   :  { %p1174_p4 = pnand %p1173_p3, %p1167_p0 }
   0x9   :  { %1177 = shalt.err (!%p1174_p4)  }
   0xa   :  { %s1332_s25 = smov [#allocation3]   ;;  %s1178_s26 = scalar_lea.vmem %s15_s23, 16 }
   0xb   :  { %13 = dma.vmem_to_smem %s11_s20, 32, %s1332_s25, [#allocation2] }
   0xc   :  { %p1179_p5 = scmp.ne.s32.totalorder %s15_s23, %s1178_s26  ;;  %p1183_p6 = scmp.lt.s32.totalorder %s15_s23, %s15_s23 }
   0xd   :  { %p1184_p7 = scmp.lt.s32.totalorder %s1178_s26, %s1178_s26 }
   0xf   :  { %p1185_p8 = por %p1184_p7, %p1183_p6 }
  0x11   :  { %p1186_p9 = pnand %p1185_p8, %p1179_p5 }
  0x13   :  { %1189 = shalt.err (!%p1186_p9)  }
  0x14   :  { %s1333_s0 = smov [#allocation4]  }
  0x15   :  { %17 = dma.vmem_to_smem %s15_s23, 16, %s1333_s0, [#allocation2] }
  0x16   :  { %1294 = dma.done.wait [#allocation2], 48 }
  0x17   :  { %1295 = vsyncadd [#allocation2], 4294967248 }
  0x18   :  { %19 = sfence }
  0x19   :  { %20 = vsyncpa [#allocation6], 0 }
  0x1a   :  { %22 = vsyncpa [#allocation6 + $0x1], 0 }
  0x1b   :  { %23 = vsyncpa [#allocation9], 0 }
  0x1c   :  { %24 = vsyncpa [#allocation7], 0 }
  0x1d   :  { %26 = vsyncpa [#allocation7 + $0x1], 0  ;;  %s1382_s1 = smov 0   ;;  %s1384_s27 = smov 0  }
  0x1e   :  { %s1386_s28 = smov 0   ;;  %s1388_s29 = smov 0  }
  0x1f   :  { %s1390_s30 = smov 0   ;;  %s1392_s6 = smov 0  }
  0x20 LB: > { %s998_s7 = sadd.s32 4294967295, %s1330_s6   ;;  %s999_s8 = sadd.s32 4294967294, %s1330_s6   ;;  %s1330_s6 = sphi %s1392_s6, %s32_s6   ;;  %s1326_s30 = sphi %s1390_s30, %s1900_s30   ;;  %s1322_s29 = sphi %s1388_s29, %s1899_s29   ;;  %s1318_s28 = sphi %s1386_s28, %s1898_s28   ;;  %s1314_s27 = sphi %s1384_s27, %s1897_s27   ;;  %s1310_s1 = sphi %s1382_s1, %s1896_s1  }
  0x21   : > { %p66_p10 = scmp.ne.s32.totalorder %s1314_s27, %s1310_s1  ;;  %p1416_p11 = scmp.eq.s32.totalorder %s998_s7, 0 }
  0x22   : > { %p1420_p12 = scmp.eq.s32.totalorder %s998_s7, 1  ;;  %p140_p13 = scmp.eq.s32.totalorder %s999_s8, 1 }
  0x23   : > { %p1426_p0 = por %p1416_p11, %p66_p10  ;;  %p1000_p1 = scmp.ge.s32.totalorder %s1330_s6, 1 }
  0x24   : > { %p1431_p2 = por %p140_p13, %p66_p10  ;;  %p147_p3 = scmp.lt.s32.totalorder %s1330_s6, 3 }
  0x25   : > { %s1881_s11 = scalar_select %p1426_p0, 1, 0 }
  0x26   : > { %s1882_s12 = scalar_select %p1431_p2, 1, 0 }
  0x27   : > { %p1436_p4 = pnand %p1000_p1, %p147_p3  ;;  %s1334_s14 = smov [#allocation8]  }
  0x28   : > { %s160_s15 = sshll.u32 %s1334_s14, 4  ;;  %s44_s17 = sadd.s32 1, %s1326_s30  ;;  %s161_s15 = int_to_ptr.vmem [resolvable:$true] %s160_s15 }
  0x29   : > { %p1074_p6 = pneg %p1436_p4  ;;  %s53_s18 = sadd.s32 1, %s1318_s28 }
  0x2a   : > { %p46_p8 = scmp.ge.s32.totalorder %s44_s17, 2  ;;  %s1201_s19 = scalar_lea.vmem %s161_s15, 64 }
  0x2b   : > { %p1445_p7 = pnand %p1074_p6, %p1416_p11  ;;  %p1202_p10 = scmp.ne.s32.totalorder %s161_s15, %s1201_s19 }
  0x2c   : > { %p1209_p3 = scmp.lt.s32.totalorder %s161_s15, %s161_s15  ;;  %p1210_p2 = scmp.lt.s32.totalorder %s1201_s19, %s1201_s19 }
  0x2d   : > { %p1192_p9 = pneg %p1445_p7 }
  0x2e   : > { %p1211_p5 = por %p1210_p2, %p1209_p3 }
  0x2f   : > { %p1204_p13 = pnand %p1202_p10, %p1192_p9 }
  0x31   : > { %p1205_p1 = pneg %p1204_p13 }
  0x33   : > { %p1212_p0 = pnand %p1211_p5, %p1205_p1 }
  0x35   : > { %1215 = shalt.err (!%p1212_p0)
}
  0x36   : > { %1077 = dma.hbm_to_vmem [thread:$0]  (!%p1445_p7), %s1874_s3, 64, %s161_s15, [#allocation9]  }
  0x37   : > { %s1902_s17 = smov (%p46_p8, %s44_s17), 0  ;;  %p60_p2 = scmp.ne.s32.totalorder %s1318_s28, %s1314_s27 }
  0x38   : > { %p61_p0 = scmp.eq.s32.totalorder %s1330_s6, 0  ;;  %s48_s22 = ssub.s32 %s1326_s30, %s1902_s17 }
  0x39   : > { %p1087_p5 = scmp.lt.s32.totalorder %s1330_s6, 2  ;;  %p51_p6 = scmp.eq.s32.totalorder %s48_s22, 0 }
  0x3a   : > { %p62_p9 = por %p61_p0, %p60_p2  ;;  %p1468_p10 = por %p1420_p12, %p60_p2 }
  0x3b   : > { %s174_s24 = sand.u32 1, %s1318_s28   ;;  %s1004_s0 = sshll.u32 %s1326_s30, 7 }
  0x3c   : > { %s1474_s25 = scalar_select %p51_p6, %s1318_s28, %s53_s18  }
  0x3d   : > { %s1003_s26 = sshll.u32 %s174_s24, 3  ;;  %s184_s14 = scalar_lea.hbm %s1873_s2, %s1004_s0 }
  0x3e   : > { %s178_s15 = scalar_lea.vmem [#allocation5], %s1003_s26  ;;  %p1480_p7 = pnand %p1087_p5, %p62_p9 }
  0x3f   : > { %s186_s16 = sshll.u32 %s178_s15, 4  ;;  %s175_s10 = scalar_lea.sflag [#allocation6], %s174_s24  ;;  %s187_s16 = int_to_ptr.vmem [resolvable:$true] %s186_s16 }
  0x40   : > { %p1218_p12 = pneg %p1480_p7  ;;  %s1229_s20 = scalar_lea.vmem %s187_s16, 128 }
  0x41   : > { %p1230_p8 = scmp.ne.s32.totalorder %s187_s16, %s1229_s20  ;;  %s1335_s18 = smov [#allocation5]  }
  0x42   : > { %s1234_s21 = sshll.u32 %s1335_s18, 4  ;;  %s1235_s21 = int_to_ptr.vmem [resolvable:$false] %s1234_s21 }
  0x43   : > { %p1232_p13 = pnand %p1230_p8, %p1218_p12  ;;  %s1236_s22 = scalar_lea.vmem %s1235_s21, 256 }
  0x44   : > { %p1237_p3 = scmp.lt.s32.totalorder %s187_s16, %s1235_s21  ;;  %p1238_p2 = scmp.lt.s32.totalorder %s1236_s22, %s1229_s20 }
  0x45   : > { %p1233_p1 = pneg %p1232_p13 }
  0x46   : > { %p1239_p0 = por %p1238_p2, %p1237_p3 }
  0x48   : > { %p1240_p6 = pnand %p1239_p0, %p1233_p1 }
  0x4a   : > { %1243 = shalt.err (!%p1240_p6)
}
  0x4b   : > { %1081 = dma.hbm_to_vmem [thread:$0]  (!%p1480_p7), %s184_s14, 128, %s187_s16, %s175_s10  }
  0x4c   : > { %195 = sbr.rel (%p1436_p4) target bundleno = 584 (0x248), region = 32  ;;  %s1491_s24 = sand.u32 (!%p1436_p4), 1, %s1314_s27  }
  0x4d   : > { %s1006_s26 = sshll.u32 (!%p1436_p4), %s1491_s24, 3  ;;  %s198_s0 = scalar_lea.sflag (!%p1436_p4), [#allocation6], %s1491_s24 }
  0x4e   : > { %s201_s7 = scalar_lea.vmem (!%p1436_p4), [#allocation5], %s1006_s26  ;;  %p1887_p5 = scmp.ne.s32.totalorder (!%p1436_p4), %s1881_s11, 0 }
  0x51   : > { %1297 = dma.done.wait (%p1887_p5), %s198_s0, 128  }
  0x52   : > { %1299 = vsyncadd (%p1887_p5), %s198_s0, 4294967168 }
  0x53   : > { %1301 = dma.done.wait (%p1416_p11), [#allocation9], 64  }
  0x54   : > { %1303 = vsyncadd (%p1416_p11), [#allocation9], 4294967232  ;;  %v1336_v0 = vmov 0.0   ;;  %vm1337_vm0 = vmmov 0   ;;  %v296_v1 = vlaneseq  ;;  %v1338_v2 = vmov 0   ;;  %v229_v9 = vld [vmem:[%s201_s7] sm:$0xff] }
  0x55   : > { %1044 = vmatprep.subr.bf16.mxu0 %v1336_v0  ;;  %1046 = vmatprep.mubr.msk.bf16.mxu0 %vm1337_vm0, %v1336_v0  ;;  %v230_v10 = vsub.s32 1, %v229_v9  ;;  %vm238_vm5 = vcmask 1043456   ;;  %vm234_vm6 = vcmask 64512   ;;  %v233_v23 = vld [vmem:[#allocation8] sm:$0xf]  ;;  %s1010_s9 = sshll.u32 %s1322_s29, 7 }
  0x56   : > { %366 = vmatprep.mubr.bf16.mxu1 %v1338_v2  ;;  %v297_v3 = vand.u32 127, %v296_v1  ;;  %v1503_v4 = vshrl.u32 %v296_v1, 7  ;;  %s292_s11 = sld [smem:[#allocation3 + %s1010_s9]]  ;;  %v416_v43 = vld [vmem:[%s1875_s4] ss:$2 sm:$0xf] }
  0x57   : > { %v231_v17 = vcvt.s32.f32 %v230_v10  ;;  %v1019_v44 = vld [vmem:[%s1875_s4 + $0x1] ss:$2 sm:$0xf]  ;;  %s1008_s16 = sshll.u32 %s1491_s24, 5  ;;  %s1041_s10 = sshll.u32 %s1322_s29, 9 }
  0x58   : > { %v298_v5 = vadd.s32 128, %v297_v3  ;;  %v303_v6 = vmul.u32 64, %v1503_v4  ;;  %v300_v7 = vadd.s32 384, %v297_v3  ;;  %v299_v8 = vadd.s32 256, %v297_v3  ;;  %s1795_s19 = scalar_lea.vmem [#allocation10], %s1008_s16  ;;  %s1829_s22 = scalar_lea.hbm %s1876_s5, %s1041_s10 }
  0x59   : > { %v232_v19 = vpack.c.bf16 %v231_v17, %v231_v17  ;;  %v422_v40 = vsub.s32 0, %v1503_v4  ;;  %v426_v41 = vsub.s32 1, %v1503_v4  ;;  %v430_v42 = vsub.s32 2, %v1503_v4  ;;  %s906_s20 = sshll.u32 %s1795_s19, 4  ;;  %s890_s26 = scalar_lea.sflag [#allocation7], %s1491_s24  ;;  %s907_s20 = int_to_ptr.vmem [resolvable:$true] %s906_s20 }
  0x5a   : > { %vm305_vm1 = vcmp.ge.s32.totalorder %v298_v5, %v303_v6  ;;  %vm307_vm2 = vcmp.ge.s32.totalorder %v300_v7, %v303_v6  ;;  %vm304_vm3 = vcmp.ge.s32.totalorder %v297_v3, %v303_v6  ;;  %vm306_vm4 = vcmp.ge.s32.totalorder %v299_v8, %v303_v6  ;;  %s1244_s0 = scalar_lea.vmem %s907_s20, 512  ;;  %s1345_s29 = smov [#allocation10]  }
  0x5b   : > { %v1012_v11 = vsel %vm305_vm1, 1.0, %v1336_v0  ;;  %v1011_v12 = vsel %vm304_vm3, 1.0, %v1336_v0  ;;  %v1014_v14 = vsel %vm307_vm2, 1.0, %v1336_v0  ;;  %v1013_v16 = vsel %vm306_vm4, 1.0, %v1336_v0  ;;  %p1245_p11 = scmp.ne.s32.totalorder %s907_s20, %s1244_s0  ;;  %s1248_s7 = sshll.u32 %s1345_s29, 4  ;;  %s1249_s7 = int_to_ptr.vmem [resolvable:$false] %s1248_s7 }
  0x5c   : > { %v317_v13 = vpack.c.bf16 %v1012_v11, %v1012_v11  ;;  %v316_v15 = vpack.c.bf16 %v1011_v12, %v1011_v12  ;;  %v319_v20 = vpack.c.bf16 %v1014_v14, %v1014_v14  ;;  %v318_v21 = vpack.c.bf16 %v1013_v16, %v1013_v16  ;;  %s1250_s9 = scalar_lea.vmem %s1249_s7, 1024  ;;  %p1251_p7 = scmp.lt.s32.totalorder %s907_s20, %s1249_s7 }
  0x5d   : > { %v240_v22 = vsel %vm238_vm5, %v232_v19, 0  ;;  %v293_v38 = vstv %s292_s11  ;;  %v434_v46 = vsub.s32 3, %v1503_v4  ;;  %v423_v48 = vrot.slane %v416_v43, %v422_v40  ;;  %p1246_p4 = pnand %p1245_p11, %p1468_p10  ;;  %p1252_p12 = scmp.lt.s32.totalorder %s1250_s9, %s1244_s0 }
  0x5e   : > { %1015 = vmatprep.subr.msk.bf16.mxu1 %vm238_vm5, %v317_v13  ;;  %v323_v18 = vsel %vm238_vm5, %v316_v15, 0  ;;  %1045 = vmatpush3.bf16.msra.mxu0 %v240_v22  ;;  %v329_v24 = vsel %vm238_vm5, %v318_v21, 0  ;;  %v294_v39 = vcvt.s32.f32 %v293_v38  ;;  %v427_v49 = vrot.slane %v416_v43, %v426_v41 }
  0x5f   : > { %349 = vmatpush1.bf16.msra.mxu1 %v323_v18  ;;  %1017 = vmatprep.subr.msk.bf16.mxu0 %vm238_vm5, %v319_v20  ;;  %v431_v50 = vrot.slane %v416_v43, %v430_v42  ;;  %v448_v51 = vrot.slane %v1019_v44, %v422_v40  ;;  %v452_v52 = vrot.slane %v1019_v44, %v426_v41  ;;  %p1247_p9 = pneg %p1246_p4  ;;  %p1253_p8 = por %p1252_p12, %p1251_p7 }
  0x60   : > { %v456_v56 = vrot.slane %v1019_v44, %v430_v42  ;;  %v435_v58 = vrot.slane %v416_v43, %v434_v46  ;;  %v1341_v42 = vmov 2131351028  }
  0x61   : > { %1047 = vmatmul.mubr.msk.bf16.vlgmr.msra.gmra.mxu0 %vm234_vm6, %v233_v23  ;;  %p1254_p13 = pnand %p1253_p8, %p1247_p9 }
  0x62   : > { %1016 = vmatmul.mubr.msk.bf16.vlgmr.msra.gmra.mxu1 %vm234_vm6, %v232_v19  ;;  %390 = vmatpush1.bf16.msra.mxu0 %v329_v24 }
  0x63   : > { %407 = vmatprep.mubr.bf16.mxu0 %v1338_v2  ;;  %v460_v2 = vrot.slane %v1019_v44, %v434_v46  ;;  %v1342_v44 = vmov 2102212464   ;;  %v1343_v46 = vmov 920167782  }
  0x69   : > { %1018 = vmatmul.mubr.msk.bf16.vlgmr.msra.gmra.mxu0 %vm234_vm6, %v232_v19 }
 0x121   : > { %v276_v27 = vpop.f32.mrf.mxu0 }
 0x122   : > { %v368_v25 = vpop.f32.mrf.mxu1  ;;  %v282_v28 = vsel %vm234_vm6, %v276_v27, 0.0 }
 0x123   : > { %v1048_v30 = vpop.f32.mrf.mxu0  ;;  %283 = vadd.xlane.f32.xlu0 %v282_v28 }
 0x124   : > { %v370_v26 = vpop.f32.mrf.mxu1 }
 0x125   : > { %v279_v32 = vpop.f32.mrf.mxu0 }
 0x126   : > { %v372_v29 = vpop.f32.mrf.mxu1 }
 0x127   : > { %v1049_v33 = vpop.f32.mrf.mxu0 }
 0x128   : > { %v373_v31 = vpop.f32.mrf.mxu1 }
 0x129   : > { %v409_v34 = vpop.f32.mrf.mxu0 }
 0x12b   : > { %v411_v35 = vpop.f32.mrf.mxu0 }
 0x12d   : > { %v413_v36 = vpop.f32.mrf.mxu0 }
 0x12f   : > { %v414_v37 = vpop.f32.mrf.mxu0 }
 0x130   : > { %v1339_v37 = vmov 683565275  }
 0x1ac   : > { %v284_v45 = vpop.xlane.xlu0 %283 }
 0x1ad   : > { %v295_v47 = vadd.f32 %v294_v39, %v284_v45  ;;  %v1340_v39 = vmov 2475754826  }
 0x1af   : > { %v369_v53 = vadd.f32 %v368_v25, %v295_v47  ;;  %v371_v54 = vadd.f32 %v370_v26, %v295_v47  ;;  %v410_v55 = vadd.f32 %v409_v34, %v295_v47  ;;  %v412_v57 = vadd.f32 %v411_v35, %v295_v47 }
 0x1b1   : > { %v440_v59 = vmul.f32 %v423_v48, %v369_v53  ;;  %v441_v60 = vmul.f32 %v427_v49, %v371_v54  ;;  %v442_v61 = vmul.f32 %v431_v50, %v410_v55  ;;  %v443_v1 = vmul.f32 %v435_v58, %v412_v57 }
 0x1b2   : > { %v1344_v53 = vmov 1326507024  }
 0x1b3   : > { %v1517_v62 = vadd.f32 %v448_v51, %v440_v59  ;;  %v1519_v63 = vadd.f32 %v452_v52, %v441_v60  ;;  %v1521_v0 = vadd.f32 %v456_v56, %v442_v61  ;;  %v1530_v10 = vadd.f32 %v460_v2, %v443_v1 }
 0x1b5   : > { %v469_v3 = vand.u32 2147483647, %v1517_v62  ;;  %v472_v4 = vand.u32 2139095040, %v1517_v62  ;;  %v573_v5 = vand.u32 2147483647, %v1519_v63  ;;  %v576_v6 = vand.u32 2139095040, %v1519_v63 }
 0x1b6   : > { %v680_v9 = vand.u32 2139095040, %v1521_v0  ;;  %v677_v13 = vand.u32 2147483647, %v1521_v0  ;;  %v784_v23 = vand.u32 2139095040, %v1530_v10  ;;  %v781_v25 = vand.u32 2147483647, %v1530_v10 }
 0x1b7   : > { %v473_v7 = vshrl.u32 %v472_v4, 23  ;;  %v476_v8 = vand.u32 8388607, %v469_v3  ;;  %v577_v11 = vshrl.u32 %v576_v6, 23  ;;  %v580_v12 = vand.u32 8388607, %v573_v5 }
 0x1b8   : > { %v681_v15 = vshrl.u32 %v680_v9, 23  ;;  %v1537_v22 = vand.u32 8388607, %v677_v13  ;;  %v1548_v35 = vshrl.u32 %v784_v23, 23 }
 0x1b9   : > { %v1020_v14 = vadd.s32 4294967169, %v473_v7  ;;  %v477_v16 = vor.u32 8388608, %v476_v8  ;;  %v1024_v17 = vadd.s32 4294967169, %v577_v11  ;;  %v581_v18 = vor.u32 8388608, %v580_v12 }
 0x1ba   : > { %v1028_v20 = vadd.s32 4294967169, %v681_v15  ;;  %v685_v34 = vor.u32 8388608, %v1537_v22 }
 0x1bb   : > { %v479_v19 = vadd.s32 1, %v1020_v14  ;;  %v583_v21 = vadd.s32 1, %v1024_v17  ;;  %v1541_v27 = vshll.u32 %v477_v16, 8  ;;  %v1543_v28 = vshll.u32 %v581_v18, 8 }
 0x1bc   : > { %v687_v24 = vadd.s32 1, %v1028_v20 }
 0x1bd   : > { %vm480_vm7 = vcmp.gt.s32.totalorder %v479_v19, 0  ;;  %vm584_vm8 = vcmp.gt.s32.totalorder %v583_v21, 0 }
 0x1be   : > { %v481_v26 = vsel %vm480_vm7, %v479_v19, 0  ;;  %v585_v31 = vsel %vm584_vm8, %v583_v21, 0  ;;  %vm688_vm9 = vcmp.gt.s32.totalorder %v687_v24, 0  ;;  %vm471_vm8 = vcmp.lt.s32.totalorder %v1517_v62, 0 }
 0x1bf   : > { %v482_v29 = vshrl.u32 %v481_v26, 5  ;;  %v483_v30 = vand.u32 31, %v481_v26  ;;  %v1545_v32 = vshrl.u32 %v585_v31, 5  ;;  %v587_v33 = vand.u32 31, %v585_v31 }
 0x1c0   : > { %v1552_v41 = vsel %vm688_vm9, %v687_v24, 0 }
 0x1c1   : > { %v484_v36 = vsub.s32 32, %v483_v30  ;;  %v486_v38 = vshll.u32 %v1339_v37, %v483_v30  ;;  %v489_v40 = vshll.u32 %v1340_v39, %v483_v30  ;;  %v492_v43 = vshll.u32 %v1341_v42, %v483_v30 }
 0x1c2   : > { %v495_v45 = vshll.u32 %v1342_v44, %v483_v30  ;;  %v498_v47 = vshll.u32 %v1343_v46, %v483_v30  ;;  %vm501_vm10 = vcmp.lt.s32.totalorder %v482_v29, 1  ;;  %vm502_vm11 = vcmp.lt.s32.totalorder %v482_v29, 2 }
 0x1c3   : > { %v487_v48 = vshrl.u32 %v1340_v39, %v484_v36  ;;  %v490_v49 = vshrl.u32 %v1341_v42, %v484_v36  ;;  %v493_v50 = vshrl.u32 %v1342_v44, %v484_v36  ;;  %v485_v51 = vshrl.u32 %v1339_v37, %v484_v36 }
 0x1c4   : > { %v496_v52 = vshrl.u32 %v1343_v46, %v484_v36  ;;  %v499_v54 = vshrl.u32 %v1344_v53, %v484_v36  ;;  %vm503_vm12 = vcmp.lt.s32.totalorder %v482_v29, 3  ;;  %v588_v58 = vsub.s32 32, %v587_v33 }
 0x1c5   : > { %v488_v55 = vor.u32 %v487_v48, %v486_v38  ;;  %v491_v56 = vor.u32 %v490_v49, %v489_v40  ;;  %v494_v57 = vor.u32 %v493_v50, %v492_v43  ;;  %vm504_vm13 = vcmp.lt.s32.totalorder %v482_v29, 4 }
 0x1c6   : > { %v497_v59 = vor.u32 %v496_v52, %v495_v45  ;;  %v500_v60 = vor.u32 %v499_v54, %v498_v47  ;;  %v590_v61 = vshll.u32 %v1339_v37, %v587_v33  ;;  %v593_v11 = vshll.u32 %v1340_v39, %v587_v33 }
 0x1c7   : > { %v505_v1 = vsel %vm501_vm10, %v485_v51, %v488_v55  ;;  %v506_v2 = vsel %vm504_vm13, %v494_v57, 2102212464  ;;  %v509_v4 = vsel %vm501_vm10, %v488_v55, %v491_v56  ;;  %v513_v6 = vsel %vm501_vm10, %v491_v56, %v494_v57 }
 0x1c8   : > { %v507_v7 = vsel %vm503_vm12, %v491_v56, %v506_v2  ;;  %v510_v8 = vsel %vm504_vm13, %v497_v59, 920167782  ;;  %v514_v9 = vsel %vm504_vm13, %v500_v60, 1326507024  ;;  %v589_v15 = vshrl.u32 %v1339_v37, %v588_v58 }
 0x1c9   : > { %v511_v12 = vsel %vm503_vm12, %v494_v57, %v510_v8  ;;  %v515_v14 = vsel %vm503_vm12, %v497_v59, %v514_v9  ;;  %v591_v16 = vshrl.u32 %v1340_v39, %v588_v58  ;;  %v508_v17 = vsel %vm502_vm11, %v505_v1, %v507_v7 }
 0x1ca   : > { %v512_v18 = vsel %vm502_vm11, %v509_v4, %v511_v12  ;;  %v516_v19 = vsel %vm502_vm11, %v513_v6, %v515_v14  ;;  %v594_v20 = vshrl.u32 %v1341_v42, %v588_v58  ;;  %v596_v36 = vshll.u32 %v1341_v42, %v587_v33 }
 0x1cb   : > { %v1578_v21 = vmul.u32.u64.low %v1541_v27, %v516_v19  ;;  %v1579_v23 = vmul.u32.u64.high %v1541_v27, %v516_v19, %v1578_v21  ;;  %v1582_v24 = vmul.u32.u64.low %v1541_v27, %v512_v18  ;;  %v1583_v26 = vmul.u32.u64.high %v1541_v27, %v512_v18, %v1582_v24 }
 0x1cc   : > { %v592_v30 = vor.u32 %v591_v16, %v590_v61  ;;  %v595_v31 = vor.u32 %v594_v20, %v593_v11  ;;  %v597_v38 = vshrl.u32 %v1342_v44, %v588_v58  ;;  %v524_v29 = vmul.u32 %v1541_v27, %v508_v17 }
 0x1cd   : > { %v599_v40 = vshll.u32 %v1342_v44, %v587_v33  ;;  %v600_v43 = vshrl.u32 %v1343_v46, %v588_v58  ;;  %v603_v45 = vshrl.u32 %v1344_v53, %v588_v58  ;;  %v602_v48 = vshll.u32 %v1343_v46, %v587_v33 }
 0x1ce   : > { %v598_v47 = vor.u32 %v597_v38, %v596_v36  ;;  %vm605_vm14 = vcmp.lt.s32.totalorder %v1545_v32, 1  ;;  %vm606_vm15 = vcmp.lt.s32.totalorder %v1545_v32, 2  ;;  %vm526_vm0 = vc.u32 %v1579_v23, %v1582_v24 }
 0x1cf   : > { %v527_v49 = vadd.s32 1, %v1583_v26  ;;  %v601_v50 = vor.u32 %v600_v43, %v599_v40  ;;  %vm607_vm1 = vcmp.lt.s32.totalorder %v1545_v32, 3  ;;  %v604_v27 = vor.u32 %v603_v45, %v602_v48 }
 0x1d0   : > { %vm608_vm2 = vcmp.lt.s32.totalorder %v1545_v32, 4  ;;  %v609_v51 = vsel %vm605_vm14, %v589_v15, %v592_v30  ;;  %v613_v52 = vsel %vm605_vm14, %v592_v30, %v595_v31  ;;  %v617_v56 = vsel %vm605_vm14, %v595_v31, %v598_v47 }
 0x1d1   : > { %v528_v54 = vsel %vm526_vm0, %v527_v49, %v1583_v26  ;;  %v610_v33 = vsel %vm608_vm2, %v598_v47, 2102212464  ;;  %v614_v55 = vsel %vm608_vm2, %v601_v50, 920167782  ;;  %v618_v60 = vsel %vm608_vm2, %v604_v27, 1326507024 }
 0x1d2   : > { %v529_v57 = vadd.s32 %v528_v54, %v524_v29  ;;  %v611_v58 = vsel %vm607_vm1, %v595_v31, %v610_v33  ;;  %v615_v59 = vsel %vm607_vm1, %v598_v47, %v614_v55  ;;  %v619_v2 = vsel %vm607_vm1, %v601_v50, %v618_v60 }
 0x1d3   : > { %v612_v61 = vsel %vm606_vm15, %v609_v51, %v611_v58  ;;  %v616_v1 = vsel %vm606_vm15, %v613_v52, %v615_v59  ;;  %v690_v4 = vshrl.u32 %v1552_v41, 5  ;;  %v620_v7 = vsel %vm606_vm15, %v617_v56, %v619_v2 }
 0x1d4   : > { %v530_v6 = vadd.s32 536870912, %v529_v57  ;;  %v1609_v8 = vmul.u32.u64.low %v1543_v28, %v616_v1  ;;  %v1610_v9 = vmul.u32.u64.high %v1543_v28, %v616_v1, %v1609_v8  ;;  %v691_v14 = vand.u32 31, %v1552_v41 }
 0x1d5   : > { %v1614_v11 = vmul.u32.u64.low %v1543_v28, %v620_v7  ;;  %v1615_v12 = vmul.u32.u64.high %v1543_v28, %v620_v7, %v1614_v11  ;;  %v1620_v15 = vshll.u32 %v685_v34, 8  ;;  %v628_v32 = vmul.u32 %v1543_v28, %v612_v61 }
 0x1d6   : > { %v1622_v16 = vshrl.u32 %v530_v6, 30  ;;  %vm709_vm3 = vcmp.lt.s32.totalorder %v690_v4, 1  ;;  %v1032_v17 = vadd.s32 4294967169, %v1548_v35  ;;  %v692_v18 = vsub.s32 32, %v691_v14 }
 0x1d7   : > { %v694_v19 = vshll.u32 %v1339_v37, %v691_v14  ;;  %v697_v20 = vshll.u32 %v1340_v39, %v691_v14  ;;  %vm711_vm4 = vcmp.lt.s32.totalorder %v690_v4, 3  ;;  %v631_v41 = vadd.s32 1, %v1610_v9 }
 0x1d8   : > { %v532_v21 = vshll.u32 %v1622_v16, 30  ;;  %v700_v22 = vshll.u32 %v1341_v42, %v691_v14  ;;  %v703_v34 = vshll.u32 %v1342_v44, %v691_v14  ;;  %vm630_vm5 = vc.u32 %v1615_v12, %v1609_v8 }
 0x1d9   : > { %v693_v28 = vshrl.u32 %v1339_v37, %v692_v18  ;;  %v695_v35 = vshrl.u32 %v1340_v39, %v692_v18  ;;  %v706_v26 = vshll.u32 %v1343_v46, %v691_v14  ;;  %v632_v31 = vsel %vm630_vm5, %v631_v41, %v1610_v9 }
 0x1da   : > { %v1637_v30 = vsub.s32 %v529_v57, %v532_v21  ;;  %v698_v36 = vshrl.u32 %v1341_v42, %v692_v18  ;;  %v701_v38 = vshrl.u32 %v1342_v44, %v692_v18  ;;  %v633_v29 = vadd.s32 %v632_v31, %v628_v32 }
 0x1db   : > { %v696_v40 = vor.u32 %v695_v35, %v694_v19  ;;  %v704_v43 = vshrl.u32 %v1343_v46, %v692_v18  ;;  %v707_v45 = vshrl.u32 %v1344_v53, %v692_v18  ;;  %vm712_vm6 = vcmp.lt.s32.totalorder %v690_v4, 4 }
 0x1dc   : > { %v535_v47 = vsub.s32 0, %v1637_v30  ;;  %v699_v48 = vor.u32 %v698_v36, %v697_v20  ;;  %v702_v49 = vor.u32 %v701_v38, %v700_v22  ;;  %v634_v50 = vadd.s32 536870912, %v633_v29 }
 0x1dd   : > { %v705_v27 = vor.u32 %v704_v43, %v703_v34  ;;  %v708_v51 = vor.u32 %v707_v45, %v706_v26  ;;  %v713_v52 = vsel %vm709_vm3, %v693_v28, %v696_v40  ;;  %vm710_vm7 = vcmp.lt.s32.totalorder %v690_v4, 2 }
 0x1de   : > { %v1021_v54 = vmin.u32 %v535_v47, %v1637_v30  ;;  %v714_v33 = vsel %vm712_vm6, %v702_v49, 2102212464  ;;  %v717_v55 = vsel %vm709_vm3, %v696_v40, %v699_v48  ;;  %v721_v56 = vsel %vm709_vm3, %v699_v48, %v702_v49 }
 0x1df   : > { %v1649_v57 = vshrl.u32 %v634_v50, 30  ;;  %v715_v58 = vsel %vm711_vm4, %v699_v48, %v714_v33  ;;  %v718_v59 = vsel %vm712_vm6, %v705_v27, 920167782  ;;  %v722_v60 = vsel %vm712_vm6, %v708_v51, 1326507024 }
 0x1e0   : > { %v537_v61 = vclz %v1021_v54  ;;  %v719_v1 = vsel %vm711_vm4, %v702_v49, %v718_v59  ;;  %v723_v2 = vsel %vm711_vm4, %v705_v27, %v722_v60  ;;  %v788_v11 = vand.u32 8388607, %v781_v25 }
 0x1e1   : > { %v636_v6 = vshll.u32 %v1649_v57, 30  ;;  %v720_v7 = vsel %vm710_vm7, %v717_v55, %v719_v1  ;;  %v724_v9 = vsel %vm710_vm7, %v721_v56, %v723_v2  ;;  %v716_v32 = vsel %vm710_vm7, %v713_v52, %v715_v58 }
 0x1e2   : > { %v1022_v14 = vadd.s32 4294967294, %v537_v61  ;;  %v1658_v18 = vmul.u32.u64.low %v1620_v15, %v724_v9  ;;  %v1659_v19 = vmul.u32.u64.high %v1620_v15, %v724_v9, %v1658_v18  ;;  %v791_v4 = vadd.s32 1, %v1032_v17 }
 0x1e3   : > { %v1661_v20 = vsub.s32 %v633_v29, %v636_v6  ;;  %v1664_v21 = vmul.u32.u64.low %v1620_v15, %v720_v7  ;;  %v1665_v41 = vmul.u32.u64.high %v1620_v15, %v720_v7, %v1664_v21  ;;  %v525_v22 = vadd.s32 %v1582_v24, %v1579_v23 }
 0x1e4   : > { %vm1023_vm9 = vcmp.lt.s32.totalorder %v1022_v14, 0  ;;  %v629_v34 = vadd.s32 %v1609_v8, %v1615_v12  ;;  %v789_v26 = vor.u32 8388608, %v788_v11  ;;  %vm792_vm10 = vcmp.gt.s32.totalorder %v791_v4, 0 }
 0x1e5   : > { %v540_v28 = vsel %vm1023_vm9, 0, %v1022_v14  ;;  %v639_v35 = vsub.s32 0, %v1661_v20  ;;  %v732_v38 = vmul.u32 %v1620_v15, %v716_v32  ;;  %v555_v17 = vsub.s32 4, %v1622_v16 }
 0x1e6   : > { %v541_v31 = vsub.s32 32, %v540_v28  ;;  %v545_v36 = vsub.s32 4294967266, %v540_v28  ;;  %vm734_vm11 = vc.u32 %v1659_v19, %v1664_v21  ;;  %v735_v23 = vadd.s32 1, %v1665_v41 }
 0x1e7   : > { %v1025_v29 = vmin.u32 %v639_v35, %v1661_v20  ;;  %v793_v24 = vsel %vm792_vm10, %v791_v4, 0  ;;  %v542_v8 = vshll.u32 %v1637_v30, %v540_v28  ;;  %v1682_v48 = vshll.u32 %v789_v26, 8 }
 0x1e8   : > { %v543_v12 = vshrl.u32 %v525_v22, %v541_v31  ;;  %v546_v40 = vadd.s32 127, %v545_v36  ;;  %v795_v43 = vand.u32 31, %v793_v24  ;;  %v736_v47 = vsel %vm734_vm11, %v735_v23, %v1665_v41 }
 0x1e9   : > { %v641_v45 = vclz %v1025_v29  ;;  %v659_v15 = vsub.s32 4, %v1649_v57  ;;  %v737_v27 = vadd.s32 %v736_v47, %v732_v38  ;;  %v1685_v54 = vshrl.u32 %v793_v24, 5 }
 0x1ea   : > { %v544_v49 = vor.u32 %v543_v12, %v542_v8  ;;  %v547_v50 = vshll.u32 %v546_v40, 23  ;;  %v796_v51 = vsub.s32 32, %v795_v43  ;;  %v798_v33 = vshll.u32 %v1339_v37, %v795_v43 }
 0x1eb   : > { %v1026_v52 = vadd.s32 4294967294, %v641_v45  ;;  %v1691_v30 = vsel %vm471_vm8, %v555_v17, %v1622_v16  ;;  %vm1695_vm12 = vcmp.le.f32.partialorder %v469_v3, 0.7853982  ;;  %v738_v58 = vadd.s32 536870912, %v737_v27 }
 0x1ec   : > { %v548_v56 = vor.u32 4788187, %v547_v50  ;;  %v801_v59 = vshll.u32 %v1340_v39, %v795_v43  ;;  %v804_v60 = vshll.u32 %v1341_v42, %v795_v43  ;;  %v551_v61 = vcvt.s32.f32 %v544_v49 }
 0x1ed   : > { %vm1027_vm13 = vcmp.lt.s32.totalorder %v1026_v52, 0  ;;  %v799_v1 = vshrl.u32 %v1340_v39, %v796_v51  ;;  %v802_v2 = vshrl.u32 %v1341_v42, %v796_v51  ;;  %v1703_v7 = vshrl.u32 %v738_v58, 30 }
 0x1ee   : > { %v549_v16 = vand.u32 2147483647, %v548_v56  ;;  %v644_v6 = vsel %vm1027_vm13, 0, %v1026_v52  ;;  %v805_v3 = vshrl.u32 %v1342_v44, %v796_v51  ;;  %v797_v14 = vshrl.u32 %v1339_v37, %v796_v51 }
 0x1ef   : > { %v645_v9 = vsub.s32 32, %v644_v6  ;;  %v649_v11 = vsub.s32 4294967266, %v644_v6  ;;  %v807_v32 = vshll.u32 %v1342_v44, %v795_v43  ;;  %v646_v41 = vshll.u32 %v1661_v20, %v644_v6 }
 0x1f0   : > { %v552_v18 = vmul.f32 %v551_v61, %v549_v16  ;;  %v740_v4 = vshll.u32 %v1703_v7, 30  ;;  %v800_v39 = vor.u32 %v799_v1, %v798_v33  ;;  %v803_v28 = vor.u32 %v802_v2, %v801_v59 }
 0x1f1   : > { %v647_v22 = vshrl.u32 %v629_v34, %v645_v9  ;;  %v650_v42 = vadd.s32 127, %v649_v11  ;;  %v808_v35 = vshrl.u32 %v1343_v46, %v796_v51  ;;  %v806_v36 = vor.u32 %v805_v3, %v804_v60 }
 0x1f2   : > { %v553_v26 = vxor.u32 2147483648, %v552_v18  ;;  %v1711_v31 = vsub.s32 %v737_v27, %v740_v4  ;;  %v811_v38 = vshrl.u32 %v1344_v53, %v796_v51  ;;  %v810_v44 = vshll.u32 %v1343_v46, %v795_v43 }
 0x1f3   : > { %v648_v37 = vor.u32 %v647_v22, %v646_v41  ;;  %v651_v17 = vshll.u32 %v650_v42, 23  ;;  %vm813_vm14 = vcmp.lt.s32.totalorder %v1685_v54, 1  ;;  %vm575_vm15 = vcmp.lt.s32.totalorder %v1519_v63, 0 }
 0x1f4   : > { %v554_v20 = vsel %vm471_vm8, %v553_v26, %v552_v18  ;;  %v743_v34 = vsub.s32 0, %v1711_v31  ;;  %v809_v29 = vor.u32 %v808_v35, %v807_v32  ;;  %vm814_vm0 = vcmp.lt.s32.totalorder %v1685_v54, 2 }
 0x1f5   : > { %v557_v53 = vsel %vm1695_vm12, %v1517_v62, %v554_v20  ;;  %v652_v23 = vor.u32 4788187, %v651_v17  ;;  %v812_v24 = vor.u32 %v811_v38, %v810_v44  ;;  %vm816_vm1 = vcmp.lt.s32.totalorder %v1685_v54, 4 }
 0x1f6   : > { %1150 = vcosq.f32 %v557_v53  ;;  %v1029_v46 = vmin.u32 %v743_v34, %v1711_v31  ;;  %vm815_vm2 = vcmp.lt.s32.totalorder %v1685_v54, 3  ;;  %v818_v8 = vsel %vm816_vm1, %v806_v36, 2102212464 }
 0x1f7   : > { %1152 = vsinq.f32 %v557_v53  ;;  %v653_v12 = vand.u32 2147483647, %v652_v23  ;;  %v655_v40 = vcvt.s32.f32 %v648_v37  ;;  %v821_v43 = vsel %vm813_vm14, %v800_v39, %v803_v28 }
 0x1f8   : > { %v745_v45 = vclz %v1029_v46  ;;  %v817_v47 = vsel %vm813_vm14, %v797_v14, %v800_v39  ;;  %v822_v49 = vsel %vm816_vm1, %v809_v29, 920167782  ;;  %v825_v50 = vsel %vm813_vm14, %v803_v28, %v806_v36 }
 0x1f9   : > { %v656_v27 = vmul.f32 %v655_v40, %v653_v12  ;;  %v819_v51 = vsel %vm815_vm2, %v803_v28, %v818_v8  ;;  %v823_v52 = vsel %vm815_vm2, %v806_v36, %v822_v49  ;;  %v826_v33 = vsel %vm816_vm1, %v812_v24, 1326507024 }
 0x1fa   : > { %v1030_v56 = vadd.s32 4294967294, %v745_v45  ;;  %v824_v58 = vsel %vm814_vm0, %v821_v43, %v823_v52  ;;  %v827_v59 = vsel %vm815_vm2, %v809_v29, %v826_v33  ;;  %v558_v60 = vsel %vm1695_vm12, 0, %v1691_v30 }
 0x1fb   : > { %v657_v61 = vxor.u32 2147483648, %v656_v27  ;;  %v828_v1 = vsel %vm814_vm0, %v825_v50, %v827_v59  ;;  %v1753_v2 = vmul.u32.u64.low %v1682_v48, %v824_v58  ;;  %v1754_v16 = vmul.u32.u64.high %v1682_v48, %v824_v58, %v1753_v2 }
 0x1fc   : > { %vm1759_vm3 = vcmp.le.f32.partialorder %v573_v5, 0.7853982  ;;  %vm1031_vm4 = vcmp.lt.s32.totalorder %v1030_v56, 0  ;;  %v1764_v3 = vmul.u32.u64.low %v1682_v48, %v828_v1  ;;  %v1765_v55 = vmul.u32.u64.high %v1682_v48, %v828_v1, %v1764_v3 }
 0x1fd   : > { %v658_v30 = vsel %vm575_vm15, %v657_v61, %v656_v27  ;;  %v733_v9 = vadd.s32 %v1664_v21, %v1659_v19  ;;  %v748_v11 = vsel %vm1031_vm4, 0, %v1030_v56  ;;  %v562_v14 = vadd.s32 3, %v558_v60 }
 0x1fe   : > { %v661_v5 = vsel %vm1759_vm3, %v1519_v63, %v658_v30  ;;  %v749_v32 = vsub.s32 32, %v748_v11  ;;  %v753_v18 = vsub.s32 4294967266, %v748_v11  ;;  %v820_v41 = vsel %vm814_vm0, %v817_v47, %v819_v51 }
 0x1ff   : > { %1154 = vcosq.f32 %v661_v5  ;;  %v839_v4 = vadd.s32 1, %v1754_v16  ;;  %v660_v19 = vsel %vm575_vm15, %v659_v15, %v1649_v57  ;;  %v750_v21 = vshll.u32 %v1711_v31, %v748_v11 }
 0x200   : > { %1156 = vsinq.f32 %v661_v5  ;;  %v751_v39 = vshrl.u32 %v733_v9, %v749_v32  ;;  %v754_v22 = vadd.s32 127, %v753_v18  ;;  %v836_v42 = vmul.u32 %v1682_v48, %v820_v41 }
 0x201   : > { %vm838_vm5 = vc.u32 %v1765_v55, %v1753_v2  ;;  %v563_v54 = vand.u32 3, %v562_v14  ;;  %v662_v36 = vsel %vm1759_vm3, 0, %v660_v19  ;;  %vm561_vm9 = vweird.f32 %v1517_v62 }
 0x202   : > { %v752_v28 = vor.u32 %v751_v39, %v750_v21  ;;  %v755_v35 = vshll.u32 %v754_v22, 23  ;;  %v840_v26 = vsel %vm838_vm5, %v839_v4, %v1754_v16  ;;  %v666_v48 = vadd.s32 3, %v662_v36 }
 0x203   : > { %v1151_v57 = vpop.eup %1150  ;;  %v841_v15 = vadd.s32 %v840_v26, %v836_v42  ;;  %vm568_vm6 = vcmp.eq.s32.totalorder %v563_v54, 2  ;;  %vm565_vm7 = vcmp.eq.s32.totalorder %v563_v54, 0  ;;  %vm564_vm8 = vcmp.lt.s32.totalorder %v563_v54, 2 }
 0x204   : > { %v1153_v38 = vpop.eup %1152  ;;  %v756_v37 = vor.u32 4788187, %v755_v35  ;;  %v569_v31 = vxor.u32 2147483648, %v1151_v57  ;;  %v759_v34 = vcvt.s32.f32 %v752_v28  ;;  %v667_v43 = vand.u32 3, %v666_v48 }
 0x205   : > { %v842_v17 = vadd.s32 536870912, %v841_v15  ;;  %v566_v44 = vxor.u32 2147483648, %v1153_v38  ;;  %v763_v45 = vsub.s32 4, %v1703_v7  ;;  %vm679_vm10 = vcmp.lt.s32.totalorder %v1521_v0, 0 }
 0x206   : > { %v757_v20 = vand.u32 2147483647, %v756_v37  ;;  %v570_v29 = vsel %vm568_vm6, %v569_v31, %v1153_v38  ;;  %vm1801_vm11 = vcmp.le.f32.partialorder %v677_v13, 0.7853982  ;;  %vm672_vm12 = vcmp.eq.s32.totalorder %v667_v43, 2 }
 0x207   : > { %v1790_v53 = vshrl.u32 %v842_v17, 30  ;;  %v567_v23 = vsel %vm565_vm7, %v1151_v57, %v566_v44  ;;  %v764_v58 = vsel %vm679_vm10, %v763_v45, %v1703_v7  ;;  %vm669_vm13 = vcmp.eq.s32.totalorder %v667_v43, 0 }
 0x208   : > { %v760_v24 = vmul.f32 %v759_v34, %v757_v20  ;;  %v571_v46 = vsel %vm564_vm8, %v567_v23, %v570_v29  ;;  %vm668_vm14 = vcmp.lt.s32.totalorder %v667_v43, 2  ;;  %vm665_vm15 = vweird.f32 %v1519_v63 }
 0x209   : > { %v844_v8 = vshll.u32 %v1790_v53, 30  ;;  %v572_v12 = vsel %vm561_vm9, nan, %v571_v46  ;;  %v766_v6 = vsel %vm1801_vm11, 0, %v764_v58  ;;  %v837_v7 = vadd.s32 %v1753_v2, %v1765_v55 }
 0x20a   : > { %v761_v40 = vxor.u32 2147483648, %v760_v24  ;;  %885 = vst [vmem:[%s1795_s19] sm:$0xff] %v572_v12  ;;  %v770_v30 = vadd.s32 3, %v766_v6  ;;  %vm769_vm4 = vweird.f32 %v1521_v0  ;;  %vm783_vm5 = vcmp.lt.s32.totalorder %v1530_v10, 0 }
 0x20b   : > { %v845_v47 = vsub.s32 %v841_v15, %v844_v8  ;;  %v867_v15 = vsub.s32 4, %v1790_v53  ;;  %vm782_vm6 = vcmp.le.f32.partialorder %v781_v25, 0.7853982 }
 0x20c   : > { %v1155_v49 = vpop.eup %1154  ;;  %v762_v50 = vsel %vm679_vm10, %v761_v40, %v760_v24  ;;  %v771_v41 = vand.u32 3, %v770_v30  ;;  %vm873_vm10 = vweird.f32 %v1530_v10 }
 0x20d   : > { %v1157_v27 = vpop.eup %1156  ;;  %v765_v51 = vsel %vm1801_vm11, %v1521_v0, %v762_v50  ;;  %v847_v52 = vsub.s32 0, %v845_v47  ;;  %v673_v33 = vxor.u32 2147483648, %v1155_v49  ;;  %v868_v0 = vsel %vm783_vm5, %v867_v15, %v1790_v53 }
 0x20e   : > { %1158 = vcosq.f32 %v765_v51  ;;  %v670_v56 = vxor.u32 2147483648, %v1157_v27  ;;  %vm776_vm1 = vcmp.eq.s32.totalorder %v771_v41, 2  ;;  %vm773_vm2 = vcmp.eq.s32.totalorder %v771_v41, 0 }
 0x20f   : > { %1160 = vsinq.f32 %v765_v51  ;;  %v1033_v59 = vmin.u32 %v847_v52, %v845_v47  ;;  %v674_v13 = vsel %vm672_vm12, %v673_v33, %v1157_v27  ;;  %vm772_vm3 = vcmp.lt.s32.totalorder %v771_v41, 2 }
 0x210   : > { %v671_v60 = vsel %vm669_vm13, %v1155_v49, %v670_v56  ;;  %v870_v31 = vsel %vm782_vm6, 0, %v868_v0 }
 0x211   : > { %v849_v61 = vclz %v1033_v59  ;;  %v675_v1 = vsel %vm668_vm14, %v671_v60, %v674_v13  ;;  %v874_v17 = vadd.s32 3, %v870_v31 }
 0x212   : > { %v676_v16 = vsel %vm665_vm15, nan, %v675_v1 }
 0x213   : > { %v1034_v3 = vadd.s32 4294967294, %v849_v61  ;;  %886 = vst [vmem:[%s1795_s19 + $0x8] sm:$0xff] %v676_v16  ;;  %v875_v44 = vand.u32 3, %v874_v17 }
 0x215   : > { %vm1035_vm0 = vcmp.lt.s32.totalorder %v1034_v3, 0  ;;  %vm880_vm7 = vcmp.eq.s32.totalorder %v875_v44, 2  ;;  %vm877_vm8 = vcmp.eq.s32.totalorder %v875_v44, 0  ;;  %vm876_vm9 = vcmp.lt.s32.totalorder %v875_v44, 2 }
 0x216   : > { %v852_v9 = vsel %vm1035_vm0, 0, %v1034_v3 }
 0x217   : > { %v853_v11 = vsub.s32 32, %v852_v9  ;;  %v857_v14 = vsub.s32 4294967266, %v852_v9  ;;  %v854_v5 = vshll.u32 %v845_v47, %v852_v9 }
 0x219   : > { %v855_v32 = vshrl.u32 %v837_v7, %v853_v11  ;;  %v858_v18 = vadd.s32 127, %v857_v14 }
 0x21b   : > { %v1159_v63 = vpop.eup %1158  ;;  %v856_v4 = vor.u32 %v855_v32, %v854_v5  ;;  %v859_v19 = vshll.u32 %v858_v18, 23 }
 0x21c   : > { %v1161_v21 = vpop.eup %1160  ;;  %v777_v39 = vxor.u32 2147483648, %v1159_v63 }
 0x21d   : > { %v860_v22 = vor.u32 4788187, %v859_v19  ;;  %v774_v42 = vxor.u32 2147483648, %v1161_v21  ;;  %v863_v35 = vcvt.s32.f32 %v856_v4 }
 0x21e   : > { %v778_v54 = vsel %vm776_vm1, %v777_v39, %v1161_v21 }
 0x21f   : > { %v861_v28 = vand.u32 2147483647, %v860_v22  ;;  %v775_v2 = vsel %vm773_vm2, %v1159_v63, %v774_v42 }
 0x220   : > { %v779_v55 = vsel %vm772_vm3, %v775_v2, %v778_v54 }
 0x221   : > { %v864_v26 = vmul.f32 %v863_v35, %v861_v28  ;;  %v780_v36 = vsel %vm769_vm4, nan, %v779_v55 }
 0x222   : > { %887 = vst [vmem:[%s1795_s19 + $0x10] sm:$0xff] %v780_v36 }
 0x223   : > { %v865_v57 = vxor.u32 2147483648, %v864_v26 }
 0x225   : > { %v866_v38 = vsel %vm783_vm5, %v865_v57, %v864_v26 }
 0x226   : > { %v869_v37 = vsel %vm782_vm6, %v1530_v10, %v866_v38 }
 0x227   : > { %1162 = vcosq.f32 %v869_v37 }
 0x228   : > { %1164 = vsinq.f32 %v869_v37 }
 0x234   : > { %v1163_v48 = vpop.eup %1162 }
 0x235   : > { %v1165_v20 = vpop.eup %1164  ;;  %v881_v34 = vxor.u32 2147483648, %v1163_v48 }
 0x236   : > { %v878_v29 = vxor.u32 2147483648, %v1165_v20 }
 0x237   : > { %v882_v25 = vsel %vm880_vm7, %v881_v34, %v1165_v20 }
 0x238   : > { %v879_v23 = vsel %vm877_vm8, %v1163_v48, %v878_v29 }
 0x239   : > { %v883_v53 = vsel %vm876_vm9, %v879_v23, %v882_v25 }
 0x23a   : > { %v884_v24 = vsel %vm873_vm10, nan, %v883_v53 }
 0x23b   : > { %888 = vst [vmem:[%s1795_s19 + $0x18] sm:$0xff] %v884_v24 }
 0x23c   : > { %1257 = shalt.err (!%p1254_p13)
}
 0x23d   : > { %s1258_s11 = scalar_lea.hbm %s1829_s22, 512  ;;  %s1262_s8 = scalar_lea.hbm %s1876_s5, 1024 }
 0x23e   : > { %p1259_p1 = scmp.ne.s32.totalorder %s1829_s22, %s1258_s11  ;;  %p1263_p0 = scmp.lt.s32.totalorder %s1829_s22, %s1876_s5 }
 0x23f   : > { %p1264_p6 = scmp.lt.s32.totalorder %s1262_s8, %s1258_s11 }
 0x240   : > { %p1260_p3 = pnand %p1259_p1, %p1468_p10 }
 0x241   : > { %p1265_p5 = por %p1264_p6, %p1263_p0 }
 0x242   : > { %p1261_p2 = pneg %p1260_p3 }
 0x244   : > { %p1266_p11 = pnand %p1265_p5, %p1261_p2 }
 0x246   : > { %1269 = shalt.err (!%p1266_p11)
}
 0x247   : > { %1072 = dma.vmem_to_hbm [thread:$0]  (%p1468_p10), %s907_s20, 512, %s1829_s22, %s890_s26  }
 0x248 PF: > { %s918_s16 = sand.u32 1, %s1310_s1   ;;  %p1894_p4 = scmp.ne.s32.totalorder %s1882_s12, 0 }
 0x249   : > { %p1895_p9 = scmp.ge.s32.totalorder %s1330_s6, 2  ;;  %s919_s19 = scalar_lea.sflag [#allocation7], %s918_s16 }
 0x24b   : > { %p1083_p7 = pnand %p1895_p9, %p1894_p4 }
 0x24d   : > { %p1084_p12 = pneg %p1083_p7 }
 0x24f   : > { %1305 = dma.done.wait (%p1084_p12), %s919_s19, 512  }
 0x250   : > { %1307 = vsyncadd (%p1084_p12), %s919_s19, 4294966784  ;;  %s32_s6 = sadd.s32 1, %s1330_s6   ;;  %s1896_s1 = smov %s1314_s27 }
 0x251   : > { %p29_p8 = scmp.ge.s32.totalorder %s32_s6, 4   ;;  %s1897_s27 = smov %s1318_s28 }
 0x252   : > { %s1898_s28 = smov %s1474_s25  ;;  %s1899_s29 = smov %s1326_s30 }
 0x253   : > { %s1900_s30 = smov %s1902_s17  ;;  %31 = sbr.rel (!%p29_p8) target bundleno = 32 (0x20), region = 82 }
 0x258   :  { %924 = vsyncpa [#allocation6], 1 }
 0x259   :  { %926 = vsyncpa [#allocation6 + $0x1], 1 }
 0x25a   :  { %927 = vsyncpa [#allocation9], 1 }
 0x25b   :  { %928 = vsyncpa [#allocation7], 1 }
 0x25c   :  { %930 = vsyncpa [#allocation7 + $0x1], 1 }

</bundles_post_ra>
